<compile_context>
chip_gen: v6e
topology: v6e:2x2x1
jax: 0.10.0
libtpu: 0.0.40
codegen_flags: <defaults>
</compile_context>

<pallas_src>
import functools

import jax
import jax.numpy as jnp
from jax import lax
from jax.experimental import pallas as pl
from jax.experimental.pallas import tpu as pltpu

_LANE = 128
_SUBLANE = 8


def _round_up(x, m):
    return ((x + m - 1) // m) * m


def _vmem_limit_bytes():
    """Generation-aware VMEM limit with headroom; conservative fallback."""
    try:
        info = pltpu.get_tpu_info()
        cap = int(getattr(info, "vmem_capacity_bytes", 0))
    except Exception:
        cap = 0
    if cap <= 0:
        return 48 * 1024 * 1024            # safe on every generation (v7x: 64 MiB/TC)
    return int(min(max(cap * 3 // 4, 32 * 1024 * 1024), 100 * 1024 * 1024))


def _pick_row_tile(n, max_tile=512):
    # n = T_pad * Bp with both factors multiples of 8, so 64 | n and this
    # search never degenerates below 64 rows.
    t = min(n, max_tile)
    t -= t % _SUBLANE
    while n % t:
        t -= _SUBLANE
    return t


def _choose_batch(b):
    """Padded batch and batch tile; prefer >=2 parallel blocks (v7x megacore)."""
    if b <= 8:
        return 8, 8
    if b <= 256:
        bp = _round_up(b, 16)
        return bp, bp // 2
    bp = _round_up(b, 128)
    return bp, 128


def _choose_time_chunk(t, batch_tile, hp, vmem_limit):
    """Timestep chunk so the recurrence's streamed blocks fit the VMEM budget."""
    t8 = _round_up(t, _SUBLANE)
    # double-buffered z_f, z_b (4Hp) + o_f, o_b (Hp), bf16
    per_t = 2 * batch_tile * hp * 2 * (4 + 4 + 1 + 1)
    budget = int(vmem_limit * 0.6)
    tc = max(_SUBLANE, (budget // per_t) - (budget // per_t) % _SUBLANE)
    tc = min(tc, 512)
    if t8 <= tc:
        return t8, t8, 1
    t_pad = _round_up(t, tc)
    return tc, t_pad, t_pad // tc


# ----------------------------------------------------------------------------
# Pallas kernels
# ----------------------------------------------------------------------------

def _proj_kernel(*refs, h4, n_in):
    """z = sum_k x_k @ w_k + b; split columns into fwd / bwd halves.

    refs = (x_0..x_{n_in-1}, w_0..w_{n_in-1}, b, o_fwd, o_bwd)
    """
    xs = refs[:n_in]
    ws = refs[n_in:2 * n_in]
    b_ref = refs[2 * n_in]
    of_ref, ob_ref = refs[2 * n_in + 1], refs[2 * n_in + 2]
    z = jnp.dot(xs[0][...], ws[0][...], preferred_element_type=jnp.float32)
    for k in range(1, n_in):
        z = z + jnp.dot(xs[k][...], ws[k][...],
                        preferred_element_type=jnp.float32)
    z = z + b_ref[...]
    of_ref[...] = z[:, :h4].astype(of_ref.dtype)
    ob_ref[...] = z[:, h4:].astype(ob_ref.dtype)


def _head_kernel(xf_ref, xb_ref, wf_ref, wb_ref, b_ref, o_ref, *, n_dense):
    """Fused dense+gate head: tanh everywhere, sigmoid only on the one
    128-lane block that holds the gate column (halves EUP work for wide Ep)."""
    z = jnp.dot(xf_ref[...], wf_ref[...], preferred_element_type=jnp.float32)
    z = z + jnp.dot(xb_ref[...], wb_ref[...], preferred_element_type=jnp.float32)
    z = z + b_ref[...]
    out = jnp.tanh(z)
    gb = (n_dense // _LANE) * _LANE               # lane block holding gate col
    zg = z[:, gb:gb + _LANE]
    col = lax.broadcasted_iota(jnp.int32, zg.shape, 1)
    mixed = jnp.where(col == (n_dense - gb), jax.nn.sigmoid(zg),
                      out[:, gb:gb + _LANE])
    o_ref[...] = out
    o_ref[:, gb:gb + _LANE] = mixed


def _bilstm_kernel(lens_ref, zf_ref, zb_ref, whf_ref, whb_ref,
                   of_ref, ob_ref, hf, hb, cf, cb, *, tc, hp):
    """Streamed bidirectional LSTM recurrence over one timestep chunk.

    lens_ref: (BT, 1)       int32   sequence lengths for this batch tile
    zf_ref:   (Tc, BT, 4Hp) bf16    x@W_ih + b, forward dir (chunk c ascending)
    zb_ref:   (Tc, BT, 4Hp) bf16    x@W_ih + b, backward dir (chunk nc-1-c)
    whf/whb:  (Hp, 4Hp)     bf16    per-direction W_hh^T (gate cols at g*Hp)
    of/ob:    (Tc, BT, Hp)  bf16    per-direction hidden output chunks
    hf/hb/cf/cb: (BT, Hp)   f32     recurrent state, persists across chunks
    """
    c = pl.program_id(1)
    n_chunks = pl.num_programs(1)

    @pl.when(c == 0)
    def _():
        hf[...] = jnp.zeros_like(hf)
        hb[...] = jnp.zeros_like(hb)
        cf[...] = jnp.zeros_like(cf)
        cb[...] = jnp.zeros_like(cb)

    lens = lens_ref[...]                          # (BT, 1) int32
    base_f = c * tc
    base_b = (n_chunks - 1 - c) * tc

    def gates(z4, c_old):
        # PyTorch gate order i, f, g, o; slices lane-aligned (Hp % 128 == 0).
        i_g = jax.nn.sigmoid(z4[:, 0:hp])
        f_g = jax.nn.sigmoid(z4[:, hp:2 * hp])
        g_g = jnp.tanh(z4[:, 2 * hp:3 * hp])
        o_g = jax.nn.sigmoid(z4[:, 3 * hp:4 * hp])
        c_new = f_g * c_old + i_g * g_g
        return o_g * jnp.tanh(c_new), c_new

    def step(s, carry):
        tf = base_f + s                           # global forward timestep
        sb = tc - 1 - s                           # local index in backward chunk
        tb = base_b + sb                          # global backward timestep

        # Per-direction hidden matmuls (no block-diagonal zero work).
        zh_f = jnp.dot(hf[...].astype(whf_ref.dtype), whf_ref[...],
                       preferred_element_type=jnp.float32)
        zh_b = jnp.dot(hb[...].astype(whb_ref.dtype), whb_ref[...],
                       preferred_element_type=jnp.float32)
        z_f = zh_f + zf_ref[s].astype(jnp.float32)
        z_b = zh_b + zb_ref[sb].astype(jnp.float32)

        m_f = tf < lens                           # (BT, 1) bool
        m_b = tb < lens

        h_f, c_f = gates(z_f, cf[...])
        h_b, c_b = gates(z_b, cb[...])

        # pad_packed_sequence: zero output past the sequence length.
        of_ref[s] = jnp.where(m_f, h_f, 0.0).astype(of_ref.dtype)
        ob_ref[sb] = jnp.where(m_b, h_b, 0.0).astype(ob_ref.dtype)

        # Carry state only on valid steps (backward dir starts at t=len-1 with
        # zero initial state -> packed semantics).
        hf[...] = jnp.where(m_f, h_f, hf[...])
        cf[...] = jnp.where(m_f, c_f, cf[...])
        hb[...] = jnp.where(m_b, h_b, hb[...])
        cb[...] = jnp.where(m_b, c_b, cb[...])
        return carry

    lax.fori_loop(0, tc, step, 0)


# ----------------------------------------------------------------------------
# pallas_call wrappers
# ----------------------------------------------------------------------------

def _input_proj(xs, ws, b, h4, vmem_limit):
    """Hoisted input projection, row-tiled; outputs (z_fwd, z_bwd)."""
    n = xs[0].shape[0]
    tile_m = _pick_row_tile(n)
    n_in = len(xs)
    kernel = functools.partial(_proj_kernel, h4=h4, n_in=n_in)
    in_specs = ([pl.BlockSpec((tile_m, x.shape[1]), lambda i: (i, 0))
                 for x in xs]
                + [pl.BlockSpec(w.shape, lambda i: (0, 0)) for w in ws]
                + [pl.BlockSpec(b.shape, lambda i: (0, 0))])
    out_specs = [pl.BlockSpec((tile_m, h4), lambda i: (i, 0)),
                 pl.BlockSpec((tile_m, h4), lambda i: (i, 0))]
    return pl.pallas_call(
        kernel,
        out_shape=(jax.ShapeDtypeStruct((n, h4), jnp.bfloat16),
                   jax.ShapeDtypeStruct((n, h4), jnp.bfloat16)),
        grid_spec=pltpu.PrefetchScalarGridSpec(
            num_scalar_prefetch=0, grid=(n // tile_m,),
            in_specs=in_specs, out_specs=out_specs),
        compiler_params=pltpu.CompilerParams(
            dimension_semantics=("parallel",),
            vmem_limit_bytes=vmem_limit),
    )(*xs, *ws, b)


def _head(xf, xb, wf, wb, b, n_dense, vmem_limit):
    n, hp = xf.shape
    ep = wf.shape[1]
    tile_m = _pick_row_tile(n)
    kernel = functools.partial(_head_kernel, n_dense=n_dense)
    return pl.pallas_call(
        kernel,
        out_shape=jax.ShapeDtypeStruct((n, ep), jnp.float32),
        grid_spec=pltpu.PrefetchScalarGridSpec(
            num_scalar_prefetch=0, grid=(n // tile_m,),
            in_specs=[pl.BlockSpec((tile_m, hp), lambda i: (i, 0)),
                      pl.BlockSpec((tile_m, hp), lambda i: (i, 0)),
                      pl.BlockSpec(wf.shape, lambda i: (0, 0)),
                      pl.BlockSpec(wb.shape, lambda i: (0, 0)),
                      pl.BlockSpec(b.shape, lambda i: (0, 0))],
            out_specs=pl.BlockSpec((tile_m, ep), lambda i: (i, 0))),
        compiler_params=pltpu.CompilerParams(
            dimension_semantics=("parallel",),
            vmem_limit_bytes=vmem_limit),
    )(xf, xb, wf, wb, b)


def _bilstm(zf, zb, lens2d, w_hh_f, w_hh_b, *, hp, batch_tile, tc, vmem_limit):
    t_pad, bp, _ = zf.shape
    n_chunks = t_pad // tc
    kernel = functools.partial(_bilstm_kernel, tc=tc, hp=hp)
    return pl.pallas_call(
        kernel,
        out_shape=(jax.ShapeDtypeStruct((t_pad, bp, hp), jnp.bfloat16),
                   jax.ShapeDtypeStruct((t_pad, bp, hp), jnp.bfloat16)),
        grid_spec=pltpu.PrefetchScalarGridSpec(
            num_scalar_prefetch=0,
            grid=(bp // batch_tile, n_chunks),
            in_specs=[
                pl.BlockSpec((batch_tile, 1), lambda b, c: (b, 0)),
                pl.BlockSpec((tc, batch_tile, 4 * hp),
                             lambda b, c: (c, b, 0)),
                pl.BlockSpec((tc, batch_tile, 4 * hp),
                             lambda b, c: (n_chunks - 1 - c, b, 0)),
                pl.BlockSpec((hp, 4 * hp), lambda b, c: (0, 0)),
                pl.BlockSpec((hp, 4 * hp), lambda b, c: (0, 0)),
            ],
            out_specs=[
                pl.BlockSpec((tc, batch_tile, hp), lambda b, c: (c, b, 0)),
                pl.BlockSpec((tc, batch_tile, hp),
                             lambda b, c: (n_chunks - 1 - c, b, 0)),
            ],
            scratch_shapes=[pltpu.VMEM((batch_tile, hp), jnp.float32)] * 4),
        compiler_params=pltpu.CompilerParams(
            dimension_semantics=("parallel", "arbitrary"),
            vmem_limit_bytes=vmem_limit),
    )(lens2d, zf, zb, w_hh_f, w_hh_b)


# ----------------------------------------------------------------------------
# Model: deterministic parameter init + forward
# ----------------------------------------------------------------------------

class LSTMModelPallas:
    def __init__(self, word_emb_size, char_emb_size, num_tokens, hidden_size,
                 num_layers, key):
        self.word_emb_size = word_emb_size
        self.char_emb_size = char_emb_size
        self.num_tokens = num_tokens
        self.hidden_size = hidden_size
        self.num_layers = num_layers
        self.vmem_limit = _vmem_limit_bytes()

        H = hidden_size
        Hp = _round_up(H, _LANE)
        E = word_emb_size
        Ip = _round_up(char_emb_size, _LANE)
        Ep = _round_up(E + 1, _LANE)
        self.Hp, self.Ip, self.Ep = Hp, Ip, Ep

        keys = iter(jax.random.split(key, 1 + num_layers * 8 + 4))
        scale = 1.0 / jnp.sqrt(hidden_size)

        def expand_gate_cols(w_t):
            # (rows, 4H) -> (rows, 4Hp): gate g placed at [g*Hp : g*Hp+H].
            rows = w_t.shape[0]
            out = jnp.zeros((rows, 4 * Hp), jnp.float32)
            for g in range(4):
                out = out.at[:, g * Hp:g * Hp + H].set(w_t[:, g * H:(g + 1) * H])
            return out

        def pad_rows(w, rp):
            out = jnp.zeros((rp, w.shape[1]), jnp.float32)
            return out.at[:w.shape[0], :].set(w)

        # nn.Embedding(num_tokens, char_emb_size), zero-padded to Ip lanes.
        emb = jax.random.normal(next(keys), (num_tokens, char_emb_size),
                                jnp.float32)
        self.embedding = (jnp.zeros((num_tokens, Ip), jnp.float32)
                          .at[:, :char_emb_size].set(emb)
                          .astype(jnp.bfloat16))

        # nn.LSTM(char_emb, hidden, bidirectional=True, num_layers, batch_first)
        # Packed once: per-layer input-projection matrices keyed by which
        # previous-direction activations they consume, per-direction W_hh^T,
        # combined b_ih + b_hh. Weights bf16 for the MXU; state math stays f32.
        # NOTE: pre-activations z are bf16 (~1e-2 parity vs f32 PyTorch).
        self.layers = []
        for layer in range(num_layers):
            in_real = char_emb_size if layer == 0 else 2 * H
            b_both = jnp.zeros((1, 8 * Hp), jnp.float32)
            if layer == 0:
                w_in_parts = [jnp.zeros((Ip, 8 * Hp), jnp.float32)]
            else:
                w_in_parts = [jnp.zeros((Hp, 8 * Hp), jnp.float32),
                              jnp.zeros((Hp, 8 * Hp), jnp.float32)]
            w_hh_dirs = []
            for d in range(2):  # 0 = forward, 1 = reverse
                w_ih = scale * jax.random.normal(next(keys), (4 * H, in_real),
                                                 jnp.float32)
                w_hh = scale * jax.random.normal(next(keys), (4 * H, H),
                                                 jnp.float32)
                b_ih = scale * jax.random.normal(next(keys), (4 * H,),
                                                 jnp.float32)
                b_hh = scale * jax.random.normal(next(keys), (4 * H,),
                                                 jnp.float32)

                w_ih_t = jnp.transpose(w_ih)                 # (in_real, 4H)
                col = slice(d * 4 * Hp, (d + 1) * 4 * Hp)
                if layer == 0:
                    blk = pad_rows(expand_gate_cols(w_ih_t), Ip)
                    w_in_parts[0] = w_in_parts[0].at[:, col].set(blk)
                else:
                    blk_f = pad_rows(expand_gate_cols(w_ih_t[:H]), Hp)
                    blk_b = pad_rows(expand_gate_cols(w_ih_t[H:]), Hp)
                    w_in_parts[0] = w_in_parts[0].at[:, col].set(blk_f)
                    w_in_parts[1] = w_in_parts[1].at[:, col].set(blk_b)

                w_hh_dirs.append(
                    pad_rows(expand_gate_cols(jnp.transpose(w_hh)), Hp)
                    .astype(jnp.bfloat16))                   # (Hp, 4Hp)

                b_both = b_both.at[:, col].set(
                    expand_gate_cols((b_ih + b_hh)[None, :]))

            self.layers.append(
                (tuple(w.astype(jnp.bfloat16) for w in w_in_parts),
                 (w_hh_dirs[0], w_hh_dirs[1]),
                 b_both))

        # nn.Linear(2H, word_emb) and nn.Linear(2H, 1) fused into a lane-dense
        # (Hp, Ep) pair of weights (fwd-hidden rows / bwd-hidden rows).
        lin_scale = 1.0 / jnp.sqrt(2 * H)
        dense_w = lin_scale * jax.random.normal(next(keys), (E, 2 * H),
                                                jnp.float32)
        dense_b = lin_scale * jax.random.normal(next(keys), (E,), jnp.float32)
        gate_w = lin_scale * jax.random.normal(next(keys), (1, 2 * H),
                                               jnp.float32)
        gate_b = lin_scale * jax.random.normal(next(keys), (1,), jnp.float32)

        dw_t = jnp.transpose(dense_w)                        # (2H, E)
        gw_t = jnp.transpose(gate_w)                         # (2H, 1)
        wf = jnp.zeros((Hp, Ep), jnp.float32)
        wb = jnp.zeros((Hp, Ep), jnp.float32)
        wf = wf.at[:H, :E].set(dw_t[:H]).at[:H, E:E + 1].set(gw_t[:H])
        wb = wb.at[:H, :E].set(dw_t[H:]).at[:H, E:E + 1].set(gw_t[H:])
        self.w_head_f = wf.astype(jnp.bfloat16)
        self.w_head_b = wb.astype(jnp.bfloat16)
        self.b_head = (jnp.zeros((1, Ep), jnp.float32)
                       .at[0, :E].set(dense_b).at[0, E].set(gate_b[0]))

    def forward(self, X, lengths):
        B, T = X.shape
        Hp, Ip, Ep = self.Hp, self.Ip, self.Ep
        E = self.word_emb_size
        vmem_limit = self.vmem_limit

        Bp, batch_tile = _choose_batch(B)
        tc, t_pad, _ = _choose_time_chunk(T, batch_tile, Hp, vmem_limit)

        # Time-major embedding gather: transpose tiny int ids, not activations.
        ids = jnp.transpose(jnp.asarray(X, jnp.int32))        # (T, B)
        ids = jnp.pad(ids, ((0, t_pad - T), (0, Bp - B)))     # (t_pad, Bp)
        x = self.embedding[ids]                               # (t_pad, Bp, Ip)

        lengths_p = jnp.pad(jnp.asarray(lengths, jnp.int32), (0, Bp - B))
        lens2d = lengths_p[:, None]                           # (Bp, 1) int32

        n_rows = t_pad * Bp
        xs = (x.reshape(n_rows, Ip),)
        for w_in, (whh_f, whh_b), b_both in self.layers:
            # Hoisted input projection: one big row-tiled MXU matmul over all
            # timesteps and both directions.
            zf, zb = _input_proj(xs, w_in, b_both, 4 * Hp, vmem_limit)
            zf = zf.reshape(t_pad, Bp, 4 * Hp)
            zb = zb.reshape(t_pad, Bp, 4 * Hp)
            # Streamed bidirectional recurrence.
            xf, xb = _bilstm(zf, zb, lens2d, whh_f, whh_b, hp=Hp,
                             batch_tile=batch_tile, tc=tc,
                             vmem_limit=vmem_limit)
            xs = (xf.reshape(n_rows, Hp), xb.reshape(n_rows, Hp))

        # Fused dense+gate head (no activation transpose: row order of a
        # per-row matmul is irrelevant; reorder the small Ep-wide output).
        head = _head(xs[0], xs[1], self.w_head_f, self.w_head_b, self.b_head,
                     E, vmem_limit)                           # (n_rows, Ep)
        head = head.reshape(t_pad, Bp, Ep)[:T, :B]            # (T, B, Ep)
        head = jnp.transpose(head, (1, 0, 2))                 # (B, T, Ep)
        dense_result = head[:, :, :E]                         # tanh(dense(h))
        gate_result = head[:, :, E]                           # sigmoid(gate(h))
        return dense_result, gate_result


# ----------------------------------------------------------------------------
# Demo
# ----------------------------------------------------------------------------

if __name__ == "__main__":
    key = jax.random.PRNGKey(0)
    k_params, k_tokens = jax.random.split(key)

    # Small shapes consistent with the module.
    B, T = 2, 8
    num_tokens = 50
    char_emb_size = 16
    hidden_size = 32
    word_emb_size = 16
    num_layers = 2

    model = LSTMModelPallas(word_emb_size, char_emb_size, num_tokens,
                            hidden_size, num_layers, k_params)

    X = jax.random.randint(k_tokens, (B, T), 0, num_tokens, dtype=jnp.int32)
    lengths = jnp.array([8, 5], dtype=jnp.int32)

    dense_result, gate_result = model.forward(X, lengths)
    jax.block_until_ready((dense_result, gate_result))

    assert dense_result.shape == (B, T, word_emb_size)
    assert gate_result.shape == (B, T)
    assert bool(jnp.all(jnp.isfinite(dense_result)))
    assert bool(jnp.all(jnp.isfinite(gate_result)))
    print("KERNEL_OK")
</pallas_src>

<mosaic_0001>
module attributes {stable_mosaic.version = 11 : i64} {
  func.func @_proj_kernel(%arg0: i32, %arg1: memref<64x128xbf16, #tpu.memory_space<vmem>>, %arg2: memref<128x1024xbf16, #tpu.memory_space<vmem>>, %arg3: memref<1x1024xf32, #tpu.memory_space<vmem>>, %arg4: memref<64x512xbf16, #tpu.memory_space<vmem>>, %arg5: memref<64x512xbf16, #tpu.memory_space<vmem>>) attributes {dimension_semantics = [#tpu.dimension_semantics<parallel>], iteration_bounds = array<i64: 1>, scalar_prefetch = 0 : i64, scratch_operands = 0 : i64, tpu.core_type = #tpu.core_type<tc>, window_params = [{transform_indices = @transform_0, window_bounds = array<i64: 64, 128>}, {pipeline_mode = #tpu.pipeline_mode<synchronous>, transform_indices = @transform_1, window_bounds = array<i64: 128, 1024>}, {pipeline_mode = #tpu.pipeline_mode<synchronous>, transform_indices = @transform_2, window_bounds = array<i64: 1, 1024>}, {transform_indices = @transform_3, window_bounds = array<i64: 64, 512>}, {transform_indices = @transform_4, window_bounds = array<i64: 64, 512>}]} {
    %c0 = arith.constant 0 : index
    %c0_0 = arith.constant 0 : index
    %0 = vector.load %arg1[%c0, %c0_0] : memref<64x128xbf16, #tpu.memory_space<vmem>>, vector<64x128xbf16>
    %c0_1 = arith.constant 0 : index
    %c0_2 = arith.constant 0 : index
    %1 = vector.load %arg2[%c0_1, %c0_2] : memref<128x1024xbf16, #tpu.memory_space<vmem>>, vector<128x1024xbf16>
    %cst = arith.constant dense<0.000000e+00> : vector<64x1024xf32>
    %2 = tpu.matmul %0, %1, %cst {dimension_numbers = #tpu.dot_dimension_numbers<[1], [0], [0], [1], [0, 0, 1, 1], [], []>} : vector<64x128xbf16>, vector<128x1024xbf16>, vector<64x1024xf32> -> vector<64x1024xf32>
    %c0_3 = arith.constant 0 : index
    %c0_4 = arith.constant 0 : index
    %3 = vector.load %arg3[%c0_3, %c0_4] : memref<1x1024xf32, #tpu.memory_space<vmem>>, vector<1x1024xf32>
    %4 = vector.broadcast %3 : vector<1x1024xf32> to vector<64x1024xf32>
    %5 = arith.addf %2, %4 : vector<64x1024xf32>
    %6 = vector.extract_strided_slice %5 {offsets = [0, 0], sizes = [64, 512], strides = [1, 1]} : vector<64x1024xf32> to vector<64x512xf32>
    %7 = arith.truncf %6 : vector<64x512xf32> to vector<64x512xbf16>
    %c0_5 = arith.constant 0 : index
    %c0_6 = arith.constant 0 : index
    %8 = vector.load %arg4[%c0_5, %c0_6] : memref<64x512xbf16, #tpu.memory_space<vmem>>, vector<64x512xbf16>
    tpu.vector_store %arg4[%c0_5, %c0_6], %7 {strides = array<i32>} : memref<64x512xbf16, #tpu.memory_space<vmem>>, vector<64x512xbf16>,
    %9 = vector.extract_strided_slice %5 {offsets = [0, 512], sizes = [64, 512], strides = [1, 1]} : vector<64x1024xf32> to vector<64x512xf32>
    %10 = arith.truncf %9 : vector<64x512xf32> to vector<64x512xbf16>
    %c0_7 = arith.constant 0 : index
    %c0_8 = arith.constant 0 : index
    %11 = vector.load %arg5[%c0_7, %c0_8] : memref<64x512xbf16, #tpu.memory_space<vmem>>, vector<64x512xbf16>
    tpu.vector_store %arg5[%c0_7, %c0_8], %10 {strides = array<i32>} : memref<64x512xbf16, #tpu.memory_space<vmem>>, vector<64x512xbf16>,
    return
  }
  func.func @transform_0(%arg0: i32) -> (i32, i32) {
    %c0_i32 = arith.constant 0 : i32
    %c0_i32_0 = arith.constant 0 : i32
    return %arg0, %c0_i32 : i32, i32
  }
  func.func @transform_1(%arg0: i32) -> (i32, i32) {
    %c0_i32 = arith.constant 0 : i32
    %c0_i32_0 = arith.constant 0 : i32
    %c0_i32_1 = arith.constant 0 : i32
    return %c0_i32, %c0_i32_0 : i32, i32
  }
  func.func @transform_2(%arg0: i32) -> (i32, i32) {
    %c0_i32 = arith.constant 0 : i32
    %c0_i32_0 = arith.constant 0 : i32
    %c0_i32_1 = arith.constant 0 : i32
    return %c0_i32, %c0_i32_0 : i32, i32
  }
  func.func @transform_3(%arg0: i32) -> (i32, i32) {
    %c0_i32 = arith.constant 0 : i32
    %c0_i32_0 = arith.constant 0 : i32
    return %arg0, %c0_i32 : i32, i32
  }
  func.func @transform_4(%arg0: i32) -> (i32, i32) {
    %c0_i32 = arith.constant 0 : i32
    %c0_i32_0 = arith.constant 0 : i32
    return %arg0, %c0_i32 : i32, i32
  }
}

</mosaic_0001>

<bundles_post_ra>
// kernel: tpu_custom_call.1
= control target key start
LH: loop header
LB: loop body
LE: loop exit
PB: predicated region body
PF: predicated region fallthrough
CT: control target
= control target key end

     0   :  { %10 = vsyncpa [#allocation3], 0  ;;  %s1508_s0 = inlined_call_operand.hbm [shape: bf16[64,128], index: 0, kind: input, shape index: {}]   ;;  %s1509_s1 = inlined_call_operand.hbm [shape: bf16[128,1024], index: 1, kind: input, shape index: {}]   ;;  %s1510_s2 = inlined_call_operand.hbm [shape: f32[1,1024], index: 2, kind: input, shape index: {}]   ;;  %s1511_s3 = inlined_call_operand.hbm [shape: bf16[64,512], index: 3, kind: output, shape index: {0}]   ;;  %s1512_s4 = inlined_call_operand.hbm [shape: bf16[64,512], index: 4, kind: output, shape index: {1}]  }
   0x1   :  { %11 = vsyncpa [#allocation6], 0 }
   0x2   :  { %12 = vsyncpa [#allocation4], 0 }
   0x3   :  { %13 = vsyncpa [#allocation10], 0  ;;  %s1322_s15 = smov [#allocation5]  }
   0x4   :  { %s31_s16 = sshll.u32 %s1322_s15, 4  ;;  %s32_s16 = int_to_ptr.vmem [resolvable:$true] %s31_s16 }
   0x5   :  { %s1222_s17 = scalar_lea.vmem %s32_s16, 8192  ;;  %p1227_p1 = scmp.lt.s32.totalorder %s32_s16, %s32_s16 }
   0x6   :  { %p1223_p0 = scmp.ne.s32.totalorder %s32_s16, %s1222_s17  ;;  %p1228_p2 = scmp.lt.s32.totalorder %s1222_s17, %s1222_s17 }
   0x8   :  { %p1229_p3 = por %p1228_p2, %p1227_p1 }
   0xa   :  { %p1230_p4 = pnand %p1229_p3, %p1223_p0 }
   0xc   :  { %1233 = shalt.err (!%p1230_p4)
}
   0xd   :  { %s1323_s18 = smov 512   ;;  %s1324_s19 = smov 32  }
   0xe   :  { %37 = dma.hbm_to_vmem [thread:$0]  %s1509_s1, 8192, %s32_s16, [#allocation6], %s1323_s18, %s1323_s18, %s1324_s19  }
   0xf   :  { %s1325_s22 = smov [#allocation2]  }
  0x10   :  { %s19_s23 = sshll.u32 %s1325_s22, 4  ;;  %s20_s23 = int_to_ptr.vmem [resolvable:$true] %s19_s23 }
  0x11   :  { %s1242_s24 = scalar_lea.vmem %s20_s23, 512  ;;  %p1247_p6 = scmp.lt.s32.totalorder %s20_s23, %s20_s23 }
  0x12   :  { %p1243_p5 = scmp.ne.s32.totalorder %s20_s23, %s1242_s24  ;;  %p1248_p7 = scmp.lt.s32.totalorder %s1242_s24, %s1242_s24 }
  0x14   :  { %p1249_p8 = por %p1248_p7, %p1247_p6 }
  0x16   :  { %p1250_p9 = pnand %p1249_p8, %p1243_p5 }
  0x18   :  { %1253 = shalt.err (!%p1250_p9)
}
  0x19   :  { %s1326_s25 = smov 64   ;;  %s1327_s26 = smov 4  }
  0x1a   :  { %25 = dma.hbm_to_vmem [thread:$0]  %s1508_s0, 512, %s20_s23, [#allocation3], %s1326_s25, %s1326_s25, %s1327_s26  }
  0x1b   :  { %s1328_s29 = smov [#allocation7]  }
  0x1c   :  { %s44_s30 = sshll.u32 %s1328_s29, 4  ;;  %s45_s30 = int_to_ptr.vmem [resolvable:$true] %s44_s30 }
  0x1d   :  { %s1262_s1 = scalar_lea.vmem %s45_s30, 128  ;;  %p1267_p11 = scmp.lt.s32.totalorder %s45_s30, %s45_s30 }
  0x1e   :  { %p1263_p10 = scmp.ne.s32.totalorder %s45_s30, %s1262_s1  ;;  %p1268_p12 = scmp.lt.s32.totalorder %s1262_s1, %s1262_s1 }
  0x20   :  { %p1269_p13 = por %p1268_p12, %p1267_p11 }
  0x22   :  { %p1270_p0 = pnand %p1269_p13, %p1263_p10 }
  0x24   :  { %1273 = shalt.err (!%p1270_p0)
}
  0x25   :  { %47 = dma.hbm_to_vmem [thread:$0]  %s1510_s2, 128, %s45_s30, [#allocation6]  }
  0x26   :  { %1314 = dma.done.wait [#allocation3], 512  }
  0x27   :  { %1315 = vsyncadd [#allocation3], 4294966784 }
  0x28   :  { %1316 = dma.done.wait [#allocation6], 8320  }
  0x29   :  { %1317 = vsyncadd [#allocation6], 4294958976  ;;  %v1329_v0 = vmov 0   ;;  %v122_v1 = vld [vmem:[#allocation5 + $0x1c0] sm:$0xff]  ;;  %v123_v3 = vld [vmem:[#allocation5 + $0x1c8] sm:$0xff]  ;;  %s1330_s0 = smov [#allocation8]  }
  0x2a   :  { %548 = vmatprep.mubr.bf16.mxu0 %v1329_v0  ;;  %621 = vmatprep.mubr.bf16.mxu1 %v1329_v0  ;;  %v126_v2 = vld [vmem:[#allocation5 + $0x1e0] sm:$0xff]  ;;  %v127_v5 = vld [vmem:[#allocation5 + $0x1e8] sm:$0xff]  ;;  %v124_v63 = vld [vmem:[#allocation5 + $0x1d0] sm:$0xff]  ;;  %s1037_s2 = sshll.u32 %s1330_s0, 4  ;;  %s1038_s2 = int_to_ptr.vmem [resolvable:$true] %s1037_s2 }
  0x2b   :  { %v1127_v4 = vcombine.high %v122_v1, %v126_v2  ;;  %v1126_v6 = vcombine.low %v122_v1, %v126_v2  ;;  %v114_v7 = vld [vmem:[#allocation5 + $0x180] sm:$0xff]  ;;  %v1129_v9 = vcombine.high %v123_v3, %v127_v5  ;;  %v1128_v10 = vcombine.low %v123_v3, %v127_v5  ;;  %v115_v12 = vld [vmem:[#allocation5 + $0x188] sm:$0xff]  ;;  %v128_v1 = vld [vmem:[#allocation5 + $0x1f0] sm:$0xff]  ;;  %s1274_s7 = scalar_lea.vmem %s1038_s2, 2048  ;;  %p1279_p2 = scmp.lt.s32.totalorder %s1038_s2, %s1038_s2 }
  0x2c   :  { %v118_v8 = vld [vmem:[#allocation5 + $0x1a0] sm:$0xff]  ;;  %v119_v13 = vld [vmem:[#allocation5 + $0x1a8] sm:$0xff]  ;;  %v125_v2 = vld [vmem:[#allocation5 + $0x1d8] sm:$0xff]  ;;  %p1275_p1 = scmp.ne.s32.totalorder %s1038_s2, %s1274_s7  ;;  %p1280_p3 = scmp.lt.s32.totalorder %s1274_s7, %s1274_s7 }
  0x2d   :  { %v1119_v11 = vcombine.high %v114_v7, %v118_v8  ;;  %v106_v14 = vld [vmem:[#allocation5 + $0x140] sm:$0xff]  ;;  %516 = vmatprep.subr.bf16.mxu0 %v1127_v4  ;;  %v1121_v15 = vcombine.high %v115_v12, %v119_v13  ;;  %v107_v17 = vld [vmem:[#allocation5 + $0x148] sm:$0xff]  ;;  %589 = vmatprep.subr.bf16.mxu1 %v1129_v9  ;;  %v1118_v19 = vcombine.low %v114_v7, %v118_v8  ;;  %v129_v3 = vld [vmem:[#allocation5 + $0x1f8] sm:$0xff] }
  0x2e   :  { %v110_v16 = vld [vmem:[#allocation5 + $0x160] sm:$0xff]  ;;  %v111_v18 = vld [vmem:[#allocation5 + $0x168] sm:$0xff]  ;;  %517 = vmatpush1.bf16.msra.mxu0 %v1126_v6  ;;  %590 = vmatpush1.bf16.msra.mxu1 %v1128_v10  ;;  %v1120_v20 = vcombine.low %v115_v12, %v119_v13  ;;  %v1131_v6 = vcombine.high %v124_v63, %v128_v1  ;;  %v1133_v7 = vcombine.high %v125_v2, %v129_v3  ;;  %v116_v8 = vld [vmem:[#allocation5 + $0x190] sm:$0xff]  ;;  %p1281_p4 = por %p1280_p3, %p1279_p2 }
  0x2f   :  { %518 = vmatprep.subr.bf16.mxu0 %v1119_v11  ;;  %v1111_v21 = vcombine.high %v106_v14, %v110_v16  ;;  %591 = vmatprep.subr.bf16.mxu1 %v1121_v15  ;;  %v1113_v22 = vcombine.high %v107_v17, %v111_v18  ;;  %v98_v23 = vld [vmem:[#allocation5 + $0x100] sm:$0xff]  ;;  %v99_v25 = vld [vmem:[#allocation5 + $0x108] sm:$0xff]  ;;  %v1110_v27 = vcombine.low %v106_v14, %v110_v16  ;;  %v120_v9 = vld [vmem:[#allocation5 + $0x1b0] sm:$0xff] }
  0x30   :  { %v102_v24 = vld [vmem:[#allocation5 + $0x120] sm:$0xff]  ;;  %v103_v26 = vld [vmem:[#allocation5 + $0x128] sm:$0xff]  ;;  %v1112_v28 = vcombine.low %v107_v17, %v111_v18  ;;  %v117_v11 = vld [vmem:[#allocation5 + $0x198] sm:$0xff]  ;;  %v1130_v13 = vcombine.low %v124_v63, %v128_v1  ;;  %v1132_v14 = vcombine.low %v125_v2, %v129_v3  ;;  %v1123_v15 = vcombine.high %v116_v8, %v120_v9  ;;  %p1282_p5 = pnand %p1281_p4, %p1275_p1 }
  0x31   :  { %v1103_v29 = vcombine.high %v98_v23, %v102_v24  ;;  %v1105_v30 = vcombine.high %v99_v25, %v103_v26  ;;  %v90_v31 = vld [vmem:[#allocation5 + $0xc0] sm:$0xff]  ;;  %v91_v33 = vld [vmem:[#allocation5 + $0xc8] sm:$0xff]  ;;  %v1102_v35 = vcombine.low %v98_v23, %v102_v24  ;;  %v1104_v36 = vcombine.low %v99_v25, %v103_v26  ;;  %v121_v12 = vld [vmem:[#allocation5 + $0x1b8] sm:$0xff] }
  0x32   :  { %519 = vmatpush1.bf16.msra.mxu0 %v1118_v19  ;;  %592 = vmatpush1.bf16.msra.mxu1 %v1120_v20  ;;  %v94_v32 = vld [vmem:[#allocation5 + $0xe0] sm:$0xff]  ;;  %v95_v34 = vld [vmem:[#allocation5 + $0xe8] sm:$0xff]  ;;  %v1125_v16 = vcombine.high %v117_v11, %v121_v12  ;;  %v108_v17 = vld [vmem:[#allocation5 + $0x150] sm:$0xff] }
  0x33   :  { %520 = vmatprep.subr.bf16.mxu0 %v1111_v21  ;;  %593 = vmatprep.subr.bf16.mxu1 %v1113_v22  ;;  %v1095_v37 = vcombine.high %v90_v31, %v94_v32  ;;  %v82_v38 = vld [vmem:[#allocation5 + $0x80] sm:$0xff]  ;;  %v1097_v39 = vcombine.high %v91_v33, %v95_v34  ;;  %v83_v41 = vld [vmem:[#allocation5 + $0x88] sm:$0xff]  ;;  %v1094_v43 = vcombine.low %v90_v31, %v94_v32  ;;  %v112_v18 = vld [vmem:[#allocation5 + $0x170] sm:$0xff] }
  0x34   :  { %v86_v40 = vld [vmem:[#allocation5 + $0xa0] sm:$0xff]  ;;  %v87_v42 = vld [vmem:[#allocation5 + $0xa8] sm:$0xff]  ;;  %v1096_v44 = vcombine.low %v91_v33, %v95_v34  ;;  %v109_v19 = vld [vmem:[#allocation5 + $0x158] sm:$0xff]  ;;  %v1122_v21 = vcombine.low %v116_v8, %v120_v9  ;;  %v1124_v22 = vcombine.low %v117_v11, %v121_v12  ;;  %v1115_v23 = vcombine.high %v108_v17, %v112_v18 }
  0x35   :  { %v1087_v45 = vcombine.high %v82_v38, %v86_v40  ;;  %v74_v46 = vld [vmem:[#allocation5 + $0x40] sm:$0xff]  ;;  %v1089_v47 = vcombine.high %v83_v41, %v87_v42  ;;  %v75_v49 = vld [vmem:[#allocation5 + $0x48] sm:$0xff]  ;;  %v1086_v51 = vcombine.low %v82_v38, %v86_v40  ;;  %v1088_v52 = vcombine.low %v83_v41, %v87_v42  ;;  %v113_v20 = vld [vmem:[#allocation5 + $0x178] sm:$0xff] }
  0x36   :  { %521 = vmatpush1.bf16.msra.mxu0 %v1110_v27  ;;  %594 = vmatpush1.bf16.msra.mxu1 %v1112_v28  ;;  %v78_v48 = vld [vmem:[#allocation5 + $0x60] sm:$0xff]  ;;  %v79_v50 = vld [vmem:[#allocation5 + $0x68] sm:$0xff]  ;;  %v1117_v24 = vcombine.high %v109_v19, %v113_v20  ;;  %v100_v25 = vld [vmem:[#allocation5 + $0x110] sm:$0xff]  ;;  %v1116_v31 = vcombine.low %v109_v19, %v113_v20 }
  0x37   :  { %522 = vmatprep.subr.bf16.mxu0 %v1103_v29  ;;  %595 = vmatprep.subr.bf16.mxu1 %v1105_v30  ;;  %v1079_v53 = vcombine.high %v74_v46, %v78_v48  ;;  %v1081_v54 = vcombine.high %v75_v49, %v79_v50  ;;  %v66_v55 = vld [vmem:[#allocation5] sm:$0xff]  ;;  %v67_v57 = vld [vmem:[#allocation5 + $0x8] sm:$0xff]  ;;  %v1078_v59 = vcombine.low %v74_v46, %v78_v48  ;;  %v104_v26 = vld [vmem:[#allocation5 + $0x130] sm:$0xff] }
  0x38   :  { %v70_v56 = vld [vmem:[#allocation5 + $0x20] sm:$0xff]  ;;  %v71_v58 = vld [vmem:[#allocation5 + $0x28] sm:$0xff]  ;;  %v1080_v60 = vcombine.low %v75_v49, %v79_v50  ;;  %v101_v28 = vld [vmem:[#allocation5 + $0x118] sm:$0xff]  ;;  %v1114_v30 = vcombine.low %v108_v17, %v112_v18  ;;  %v1107_v32 = vcombine.high %v100_v25, %v104_v26  ;;  %v1106_v38 = vcombine.low %v100_v25, %v104_v26 }
  0x39   :  { %v1071_v61 = vcombine.high %v66_v55, %v70_v56  ;;  %v1073_v62 = vcombine.high %v67_v57, %v71_v58  ;;  %v1070_v4 = vcombine.low %v66_v55, %v70_v56  ;;  %v1072_v5 = vcombine.low %v67_v57, %v71_v58  ;;  %v1370_v10 = vld [vmem:[#allocation2] sm:$0xff]   ;;  %v1376_v27 = vld [vmem:[#allocation2 + $0x8] sm:$0xff]   ;;  %v105_v29 = vld [vmem:[#allocation5 + $0x138] sm:$0xff] }
  0x3a   :  { %523 = vmatpush1.bf16.msra.mxu0 %v1102_v35  ;;  %596 = vmatpush1.bf16.msra.mxu1 %v1104_v36  ;;  %v1109_v33 = vcombine.high %v101_v28, %v105_v29  ;;  %v92_v34 = vld [vmem:[#allocation5 + $0xd0] sm:$0xff]  ;;  %v93_v36 = vld [vmem:[#allocation5 + $0xd8] sm:$0xff]  ;;  %v1400_v11 = vld [vmem:[#allocation7] sm:$0xff] }
  0x3b   :  { %524 = vmatprep.subr.bf16.mxu0 %v1095_v37  ;;  %597 = vmatprep.subr.bf16.mxu1 %v1097_v39  ;;  %v96_v35 = vld [vmem:[#allocation5 + $0xf0] sm:$0xff]  ;;  %v97_v37 = vld [vmem:[#allocation5 + $0xf8] sm:$0xff]  ;;  %v1108_v39 = vcombine.low %v101_v28, %v105_v29 }
  0x3c   :  { %v1099_v40 = vcombine.high %v92_v34, %v96_v35  ;;  %v1101_v41 = vcombine.high %v93_v36, %v97_v37  ;;  %v84_v42 = vld [vmem:[#allocation5 + $0x90] sm:$0xff]  ;;  %v89_v46 = vld [vmem:[#allocation5 + $0xb8] sm:$0xff]  ;;  %v1100_v48 = vcombine.low %v93_v36, %v97_v37 }
  0x3d   :  { %v73_v63 = vld [vmem:[#allocation5 + $0x38] sm:$0xff] }
  0x3e   :  { %525 = vmatpush1.bf16.msra.mxu0 %v1094_v43  ;;  %598 = vmatpush1.bf16.msra.mxu1 %v1096_v44  ;;  %v88_v43 = vld [vmem:[#allocation5 + $0xb0] sm:$0xff] }
  0x3f   :  { %526 = vmatprep.subr.bf16.mxu0 %v1087_v45  ;;  %599 = vmatprep.subr.bf16.mxu1 %v1089_v47  ;;  %v1212_v44 = vld [vmem:[#allocation2 + $0x10] sm:$0xff]   ;;  %v85_v45 = vld [vmem:[#allocation5 + $0x98] sm:$0xff]  ;;  %v1098_v47 = vcombine.low %v92_v34, %v96_v35  ;;  %v1091_v49 = vcombine.high %v84_v42, %v88_v43  ;;  %v1090_v55 = vcombine.low %v84_v42, %v88_v43 }
  0x40   :  { %v1093_v50 = vcombine.high %v85_v45, %v89_v46  ;;  %v1092_v56 = vcombine.low %v85_v45, %v89_v46 }
  0x42   :  { %527 = vmatpush1.bf16.msra.mxu0 %v1086_v51  ;;  %600 = vmatpush1.bf16.msra.mxu1 %v1088_v52  ;;  %v76_v51 = vld [vmem:[#allocation5 + $0x50] sm:$0xff] }
  0x43   :  { %528 = vmatprep.subr.bf16.mxu0 %v1079_v53  ;;  %601 = vmatprep.subr.bf16.mxu1 %v1081_v54  ;;  %v80_v52 = vld [vmem:[#allocation5 + $0x70] sm:$0xff]  ;;  %v77_v53 = vld [vmem:[#allocation5 + $0x58] sm:$0xff] }
  0x44   :  { %v81_v54 = vld [vmem:[#allocation5 + $0x78] sm:$0xff]  ;;  %v1083_v57 = vcombine.high %v76_v51, %v80_v52  ;;  %v1082_v1 = vcombine.low %v76_v51, %v80_v52 }
  0x45   :  { %v1085_v58 = vcombine.high %v77_v53, %v81_v54  ;;  %v1084_v2 = vcombine.low %v77_v53, %v81_v54 }
  0x46   :  { %529 = vmatpush1.bf16.msra.mxu0 %v1078_v59  ;;  %602 = vmatpush1.bf16.msra.mxu1 %v1080_v60  ;;  %v68_v59 = vld [vmem:[#allocation5 + $0x10] sm:$0xff] }
  0x47   :  { %530 = vmatprep.subr.bf16.mxu0 %v1071_v61  ;;  %603 = vmatprep.subr.bf16.mxu1 %v1073_v62  ;;  %v72_v60 = vld [vmem:[#allocation5 + $0x30] sm:$0xff]  ;;  %v1213_v61 = vld [vmem:[#allocation2 + $0x18] sm:$0xff]  }
  0x48   :  { %v69_v62 = vld [vmem:[#allocation5 + $0x18] sm:$0xff]  ;;  %v1075_v3 = vcombine.high %v68_v59, %v72_v60 }
  0x4a   :  { %531 = vmatpush1.bf16.msra.mxu0 %v1070_v4  ;;  %604 = vmatpush1.bf16.msra.mxu1 %v1072_v5  ;;  %v1077_v4 = vcombine.high %v69_v62, %v73_v63  ;;  %v1074_v5 = vcombine.low %v68_v59, %v72_v60 }
  0x4b   :  { %662 = vmatprep.subr.bf16.mxu0 %v1131_v6  ;;  %735 = vmatprep.subr.bf16.mxu1 %v1133_v7  ;;  %v1076_v6 = vcombine.low %v69_v62, %v73_v63  ;;  %v132_v7 = vlaneseq }
  0x4d   :  { %549 = vmatmul.mubr.bf16.vlgmr.msra.gmra.mxu0 %v1370_v10  ;;  %622 = vmatmul.mubr.bf16.vlgmr.msra.gmra.mxu1 %v1370_v10  ;;  %v1396_v8 = vshrl.u32 %v132_v7, 7 }
  0x4e   :  { %663 = vmatpush1.bf16.msra.mxu0 %v1130_v13  ;;  %736 = vmatpush1.bf16.msra.mxu1 %v1132_v14 }
  0x4f   :  { %664 = vmatprep.subr.bf16.mxu0 %v1123_v15  ;;  %737 = vmatprep.subr.bf16.mxu1 %v1125_v16  ;;  %v134_v9 = vsub.s32 0, %v1396_v8  ;;  %v142_v12 = vsub.s32 2, %v1396_v8  ;;  %v146_v13 = vsub.s32 3, %v1396_v8 }
  0x50   :  { %558 = vmatprep.mubr.bf16.mxu0 %v1329_v0  ;;  %631 = vmatprep.mubr.bf16.mxu1 %v1329_v0 }
  0x51   :  { %v1405_v14 = vrot.slane %v1400_v11, %v134_v9  ;;  %v1411_v16 = vrot.slane %v1400_v11, %v142_v12  ;;  %v1414_v17 = vrot.slane %v1400_v11, %v146_v13 }
  0x52   :  { %665 = vmatpush1.bf16.msra.mxu0 %v1122_v21  ;;  %738 = vmatpush1.bf16.msra.mxu1 %v1124_v22 }
  0x53   :  { %666 = vmatprep.subr.bf16.mxu0 %v1115_v23  ;;  %739 = vmatprep.subr.bf16.mxu1 %v1117_v24 }
  0x55   :  { %559 = vmatmul.mubr.bf16.gmra.mxu0 %v1376_v27  ;;  %632 = vmatmul.mubr.bf16.gmra.mxu1 %v1376_v27 }
  0x56   :  { %667 = vmatpush1.bf16.msra.mxu0 %v1114_v30  ;;  %740 = vmatpush1.bf16.msra.mxu1 %v1116_v31 }
  0x57   :  { %668 = vmatprep.subr.bf16.mxu0 %v1107_v32  ;;  %741 = vmatprep.subr.bf16.mxu1 %v1109_v33 }
  0x58   :  { %568 = vmatprep.mubr.bf16.mxu0 %v1329_v0  ;;  %641 = vmatprep.mubr.bf16.mxu1 %v1329_v0 }
  0x5a   :  { %669 = vmatpush1.bf16.msra.mxu0 %v1106_v38  ;;  %742 = vmatpush1.bf16.msra.mxu1 %v1108_v39 }
  0x5b   :  { %670 = vmatprep.subr.bf16.mxu0 %v1099_v40  ;;  %743 = vmatprep.subr.bf16.mxu1 %v1101_v41 }
  0x5d   :  { %569 = vmatmul.mubr.bf16.gmra.mxu0 %v1212_v44  ;;  %642 = vmatmul.mubr.bf16.gmra.mxu1 %v1212_v44 }
  0x5e   :  { %671 = vmatpush1.bf16.msra.mxu0 %v1098_v47  ;;  %744 = vmatpush1.bf16.msra.mxu1 %v1100_v48 }
  0x5f   :  { %672 = vmatprep.subr.bf16.mxu0 %v1091_v49  ;;  %745 = vmatprep.subr.bf16.mxu1 %v1093_v50 }
  0x60   :  { %578 = vmatprep.mubr.bf16.mxu0 %v1329_v0  ;;  %651 = vmatprep.mubr.bf16.mxu1 %v1329_v0 }
  0x62   :  { %673 = vmatpush1.bf16.msra.mxu0 %v1090_v55  ;;  %746 = vmatpush1.bf16.msra.mxu1 %v1092_v56 }
  0x63   :  { %674 = vmatprep.subr.bf16.mxu0 %v1083_v57  ;;  %747 = vmatprep.subr.bf16.mxu1 %v1085_v58 }
  0x65   :  { %579 = vmatmul.mubr.bf16.gmra.mxu0 %v1213_v61  ;;  %652 = vmatmul.mubr.bf16.gmra.mxu1 %v1213_v61 }
  0x66   :  { %675 = vmatpush1.bf16.msra.mxu0 %v1082_v1  ;;  %748 = vmatpush1.bf16.msra.mxu1 %v1084_v2 }
  0x67   :  { %676 = vmatprep.subr.bf16.mxu0 %v1075_v3  ;;  %749 = vmatprep.subr.bf16.mxu1 %v1077_v4 }
  0x68   :  { %694 = vmatprep.mubr.bf16.mxu0 %v1329_v0  ;;  %767 = vmatprep.mubr.bf16.mxu1 %v1329_v0 }
  0x6a   :  { %677 = vmatpush1.bf16.msra.mxu0 %v1074_v5  ;;  %750 = vmatpush1.bf16.msra.mxu1 %v1076_v6 }
  0x6d   :  { %695 = vmatmul.mubr.bf16.vlgmr.msra.gmra.mxu0 %v1370_v10  ;;  %768 = vmatmul.mubr.bf16.vlgmr.msra.gmra.mxu1 %v1370_v10  ;;  %v138_v10 = vsub.s32 1, %v1396_v8 }
  0x6e   :  { %704 = vmatprep.mubr.bf16.mxu0 %v1329_v0  ;;  %777 = vmatprep.mubr.bf16.mxu1 %v1329_v0 }
  0x75   :  { %705 = vmatmul.mubr.bf16.gmra.mxu0 %v1376_v27  ;;  %778 = vmatmul.mubr.bf16.gmra.mxu1 %v1376_v27 }
  0x76   :  { %714 = vmatprep.mubr.bf16.mxu0 %v1329_v0  ;;  %787 = vmatprep.mubr.bf16.mxu1 %v1329_v0 }
  0x7d   :  { %715 = vmatmul.mubr.bf16.gmra.mxu0 %v1212_v44  ;;  %788 = vmatmul.mubr.bf16.gmra.mxu1 %v1212_v44 }
  0x7e   :  { %724 = vmatprep.mubr.bf16.mxu0 %v1329_v0  ;;  %797 = vmatprep.mubr.bf16.mxu1 %v1329_v0  ;;  %v1408_v0 = vrot.slane %v1400_v11, %v138_v10 }
  0x85   :  { %725 = vmatmul.mubr.bf16.gmra.mxu0 %v1213_v61  ;;  %798 = vmatmul.mubr.bf16.gmra.mxu1 %v1213_v61 }
 0x10d   :  { %v550_v15 = vpop.f32.mrf.mxu0  ;;  %v623_v18 = vpop.f32.mrf.mxu1 }
 0x10e   :  { %v551_v20 = vadd.f32 %v550_v15, %v1405_v14  ;;  %v624_v23 = vadd.f32 %v623_v18, %v1411_v16 }
 0x10f   :  { %v552_v19 = vpop.f32.mrf.mxu0  ;;  %v625_v22 = vpop.f32.mrf.mxu1 }
 0x110   :  { %v553_v21 = vadd.f32 %v552_v19, %v1408_v0  ;;  %v626_v24 = vadd.f32 %v625_v22, %v1414_v17 }
 0x111   :  { %v554_v25 = vpop.f32.mrf.mxu0  ;;  %v627_v27 = vpop.f32.mrf.mxu1 }
 0x112   :  { %v1166_v26 = vpack.c.bf16 %v553_v21, %v551_v20  ;;  %v1167_v28 = vpack.c.bf16 %v626_v24, %v624_v23  ;;  %v555_v30 = vadd.f32 %v554_v25, %v1405_v14  ;;  %v628_v33 = vadd.f32 %v627_v27, %v1411_v16 }
 0x113   :  { %v556_v29 = vpop.f32.mrf.mxu0  ;;  %v629_v32 = vpop.f32.mrf.mxu1  ;;  %v150_v25 = vsub.s32 4, %v1396_v8 }
 0x114   :  { %904 = vst [vmem:[#allocation8] sm:$0xff] %v1166_v26  ;;  %v557_v31 = vadd.f32 %v556_v29, %v1408_v0  ;;  %905 = vst [vmem:[#allocation8 + $0x8] sm:$0xff] %v1167_v28  ;;  %v630_v34 = vadd.f32 %v629_v32, %v1414_v17  ;;  %v154_v26 = vsub.s32 5, %v1396_v8 }
 0x115   :  { %v560_v35 = vpop.f32.mrf.mxu0  ;;  %v633_v37 = vpop.f32.mrf.mxu1 }
 0x116   :  { %v1168_v36 = vpack.c.bf16 %v557_v31, %v555_v30  ;;  %v1169_v38 = vpack.c.bf16 %v630_v34, %v628_v33  ;;  %v561_v40 = vadd.f32 %v560_v35, %v1405_v14  ;;  %v634_v43 = vadd.f32 %v633_v37, %v1411_v16 }
 0x117   :  { %v562_v39 = vpop.f32.mrf.mxu0  ;;  %v635_v42 = vpop.f32.mrf.mxu1  ;;  %v158_v30 = vsub.s32 6, %v1396_v8  ;;  %v162_v31 = vsub.s32 7, %v1396_v8 }
 0x118   :  { %906 = vst [vmem:[#allocation8 + $0x10] sm:$0xff] %v1168_v36  ;;  %v563_v41 = vadd.f32 %v562_v39, %v1408_v0  ;;  %907 = vst [vmem:[#allocation8 + $0x18] sm:$0xff] %v1169_v38  ;;  %v636_v44 = vadd.f32 %v635_v42, %v1414_v17  ;;  %v1451_v39 = vrot.slane %v1400_v11, %v150_v25 }
 0x119   :  { %v564_v45 = vpop.f32.mrf.mxu0  ;;  %v637_v47 = vpop.f32.mrf.mxu1 }
 0x11a   :  { %v1170_v46 = vpack.c.bf16 %v563_v41, %v561_v40  ;;  %v1171_v48 = vpack.c.bf16 %v636_v44, %v634_v43  ;;  %v565_v50 = vadd.f32 %v564_v45, %v1405_v14  ;;  %v638_v53 = vadd.f32 %v637_v47, %v1411_v16 }
 0x11b   :  { %v566_v49 = vpop.f32.mrf.mxu0  ;;  %v639_v52 = vpop.f32.mrf.mxu1  ;;  %v1454_v40 = vrot.slane %v1400_v11, %v154_v26  ;;  %v1459_v43 = vrot.slane %v1400_v11, %v158_v30 }
 0x11c   :  { %908 = vst [vmem:[#allocation8 + $0x20] sm:$0xff] %v1170_v46  ;;  %v567_v51 = vadd.f32 %v566_v49, %v1408_v0  ;;  %909 = vst [vmem:[#allocation8 + $0x28] sm:$0xff] %v1171_v48  ;;  %v640_v54 = vadd.f32 %v639_v52, %v1414_v17 }
 0x11d   :  { %v570_v55 = vpop.f32.mrf.mxu0  ;;  %v643_v57 = vpop.f32.mrf.mxu1 }
 0x11e   :  { %v1172_v56 = vpack.c.bf16 %v567_v51, %v565_v50  ;;  %v1173_v58 = vpack.c.bf16 %v640_v54, %v638_v53  ;;  %v571_v60 = vadd.f32 %v570_v55, %v1405_v14  ;;  %v644_v63 = vadd.f32 %v643_v57, %v1411_v16 }
 0x11f   :  { %v572_v59 = vpop.f32.mrf.mxu0  ;;  %v645_v62 = vpop.f32.mrf.mxu1 }
 0x120   :  { %910 = vst [vmem:[#allocation8 + $0x30] sm:$0xff] %v1172_v56  ;;  %v573_v61 = vadd.f32 %v572_v59, %v1408_v0  ;;  %911 = vst [vmem:[#allocation8 + $0x38] sm:$0xff] %v1173_v58  ;;  %v646_v1 = vadd.f32 %v645_v62, %v1414_v17 }
 0x121   :  { %v574_v2 = vpop.f32.mrf.mxu0  ;;  %v647_v4 = vpop.f32.mrf.mxu1 }
 0x122   :  { %v1174_v3 = vpack.c.bf16 %v573_v61, %v571_v60  ;;  %v1175_v5 = vpack.c.bf16 %v646_v1, %v644_v63  ;;  %v575_v7 = vadd.f32 %v574_v2, %v1405_v14  ;;  %v648_v12 = vadd.f32 %v647_v4, %v1411_v16 }
 0x123   :  { %v576_v6 = vpop.f32.mrf.mxu0  ;;  %v649_v10 = vpop.f32.mrf.mxu1 }
 0x124   :  { %912 = vst [vmem:[#allocation8 + $0x40] sm:$0xff] %v1174_v3  ;;  %v577_v9 = vadd.f32 %v576_v6, %v1408_v0  ;;  %913 = vst [vmem:[#allocation8 + $0x48] sm:$0xff] %v1175_v5  ;;  %v650_v13 = vadd.f32 %v649_v10, %v1414_v17 }
 0x125   :  { %v580_v15 = vpop.f32.mrf.mxu0  ;;  %v653_v19 = vpop.f32.mrf.mxu1 }
 0x126   :  { %v1176_v18 = vpack.c.bf16 %v577_v9, %v575_v7  ;;  %v1177_v20 = vpack.c.bf16 %v650_v13, %v648_v12  ;;  %v581_v22 = vadd.f32 %v580_v15, %v1405_v14  ;;  %v654_v27 = vadd.f32 %v653_v19, %v1411_v16 }
 0x127   :  { %v582_v21 = vpop.f32.mrf.mxu0  ;;  %v655_v24 = vpop.f32.mrf.mxu1 }
 0x128   :  { %914 = vst [vmem:[#allocation8 + $0x50] sm:$0xff] %v1176_v18  ;;  %v583_v23 = vadd.f32 %v582_v21, %v1408_v0  ;;  %915 = vst [vmem:[#allocation8 + $0x58] sm:$0xff] %v1177_v20  ;;  %v656_v28 = vadd.f32 %v655_v24, %v1414_v17 }
 0x129   :  { %v584_v29 = vpop.f32.mrf.mxu0  ;;  %v657_v33 = vpop.f32.mrf.mxu1 }
 0x12a   :  { %v1178_v32 = vpack.c.bf16 %v583_v23, %v581_v22  ;;  %v1179_v34 = vpack.c.bf16 %v656_v28, %v654_v27  ;;  %v585_v36 = vadd.f32 %v584_v29, %v1405_v14  ;;  %v658_v8 = vadd.f32 %v657_v33, %v1411_v16 }
 0x12b   :  { %v586_v35 = vpop.f32.mrf.mxu0  ;;  %v659_v38 = vpop.f32.mrf.mxu1  ;;  %v1462_v14 = vrot.slane %v1400_v11, %v162_v31 }
 0x12c   :  { %916 = vst [vmem:[#allocation8 + $0x60] sm:$0xff] %v1178_v32  ;;  %v587_v37 = vadd.f32 %v586_v35, %v1408_v0  ;;  %917 = vst [vmem:[#allocation8 + $0x68] sm:$0xff] %v1179_v34  ;;  %v660_v41 = vadd.f32 %v659_v38, %v1414_v17 }
 0x12d   :  { %v696_v42 = vpop.f32.mrf.mxu0  ;;  %v769_v44 = vpop.f32.mrf.mxu1 }
 0x12e   :  { %v1180_v0 = vpack.c.bf16 %v587_v37, %v585_v36  ;;  %v1181_v45 = vpack.c.bf16 %v660_v41, %v658_v8  ;;  %v697_v47 = vadd.f32 %v696_v42, %v1451_v39  ;;  %v770_v17 = vadd.f32 %v769_v44, %v1459_v43 }
 0x12f   :  { %v698_v46 = vpop.f32.mrf.mxu0  ;;  %v771_v16 = vpop.f32.mrf.mxu1 }
 0x130   :  { %918 = vst [vmem:[#allocation8 + $0x70] sm:$0xff] %v1180_v0  ;;  %v699_v48 = vadd.f32 %v698_v46, %v1454_v40  ;;  %919 = vst [vmem:[#allocation8 + $0x78] sm:$0xff] %v1181_v45  ;;  %v772_v49 = vadd.f32 %v771_v16, %v1462_v14 }
 0x131   :  { %v700_v50 = vpop.f32.mrf.mxu0  ;;  %v773_v11 = vpop.f32.mrf.mxu1 }
 0x132   :  { %v1182_v51 = vpack.c.bf16 %v699_v48, %v697_v47 }
 0x133   :  { %1285 = shalt.err (!%p1282_p5)
}
 0x134   :  { %s1331_s8 = smov 256   ;;  %s1332_s9 = smov 16   ;;  %v1183_v52 = vpack.c.bf16 %v772_v49, %v770_v17  ;;  %v702_v53 = vpop.f32.mrf.mxu0  ;;  %1016 = vst [vmem:[#allocation9] sm:$0xff] %v1182_v51  ;;  %v701_v54 = vadd.f32 %v700_v50, %v1451_v39  ;;  %v775_v56 = vpop.f32.mrf.mxu1  ;;  %v774_v57 = vadd.f32 %v773_v11, %v1459_v43 }
 0x135   :  { %1043 = dma.vmem_to_hbm [thread:$0]  %s1038_s2, 2048, %s1511_s3, [#allocation4], %s1331_s8, %s1331_s8, %s1332_s9   ;;  %v703_v55 = vadd.f32 %v702_v53, %v1454_v40  ;;  %v776_v58 = vadd.f32 %v775_v56, %v1462_v14 }
 0x136   :  { %1017 = vst [vmem:[#allocation9 + $0x8] sm:$0xff] %v1183_v52  ;;  %v706_v59 = vpop.f32.mrf.mxu0  ;;  %v779_v61 = vpop.f32.mrf.mxu1  ;;  %s1333_s3 = smov [#allocation9]  }
 0x137   :  { %v1184_v60 = vpack.c.bf16 %v703_v55, %v701_v54  ;;  %v1185_v62 = vpack.c.bf16 %v776_v58, %v774_v57  ;;  %v707_v1 = vadd.f32 %v706_v59, %v1451_v39  ;;  %v780_v4 = vadd.f32 %v779_v61, %v1459_v43  ;;  %s1049_s12 = sshll.u32 %s1333_s3, 4  ;;  %s1050_s12 = int_to_ptr.vmem [resolvable:$true] %s1049_s12 }
 0x138   :  { %v708_v63 = vpop.f32.mrf.mxu0  ;;  %v781_v3 = vpop.f32.mrf.mxu1  ;;  %s1294_s13 = scalar_lea.vmem %s1050_s12, 2048  ;;  %p1299_p7 = scmp.lt.s32.totalorder %s1050_s12, %s1050_s12 }
 0x139   :  { %1018 = vst [vmem:[#allocation9 + $0x10] sm:$0xff] %v1184_v60  ;;  %v709_v2 = vadd.f32 %v708_v63, %v1454_v40  ;;  %1019 = vst [vmem:[#allocation9 + $0x18] sm:$0xff] %v1185_v62  ;;  %v782_v5 = vadd.f32 %v781_v3, %v1462_v14  ;;  %p1295_p6 = scmp.ne.s32.totalorder %s1050_s12, %s1294_s13  ;;  %p1300_p8 = scmp.lt.s32.totalorder %s1294_s13, %s1294_s13 }
 0x13a   :  { %v710_v6 = vpop.f32.mrf.mxu0  ;;  %v783_v9 = vpop.f32.mrf.mxu1 }
 0x13b   :  { %v1186_v7 = vpack.c.bf16 %v709_v2, %v707_v1  ;;  %v1187_v10 = vpack.c.bf16 %v782_v5, %v780_v4  ;;  %v711_v13 = vadd.f32 %v710_v6, %v1451_v39  ;;  %v784_v19 = vadd.f32 %v783_v9, %v1459_v43  ;;  %p1301_p9 = por %p1300_p8, %p1299_p7 }
 0x13c   :  { %v712_v12 = vpop.f32.mrf.mxu0  ;;  %v785_v18 = vpop.f32.mrf.mxu1 }
 0x13d   :  { %1020 = vst [vmem:[#allocation9 + $0x20] sm:$0xff] %v1186_v7  ;;  %v713_v15 = vadd.f32 %v712_v12, %v1454_v40  ;;  %1021 = vst [vmem:[#allocation9 + $0x28] sm:$0xff] %v1187_v10  ;;  %v786_v20 = vadd.f32 %v785_v18, %v1462_v14  ;;  %p1302_p10 = pnand %p1301_p9, %p1295_p6 }
 0x13e   :  { %v716_v21 = vpop.f32.mrf.mxu0  ;;  %v789_v23 = vpop.f32.mrf.mxu1 }
 0x13f   :  { %v1188_v22 = vpack.c.bf16 %v713_v15, %v711_v13  ;;  %v1189_v24 = vpack.c.bf16 %v786_v20, %v784_v19  ;;  %v717_v26 = vadd.f32 %v716_v21, %v1451_v39  ;;  %v790_v29 = vadd.f32 %v789_v23, %v1459_v43 }
 0x140   :  { %v718_v25 = vpop.f32.mrf.mxu0  ;;  %v791_v28 = vpop.f32.mrf.mxu1 }
 0x141   :  { %1022 = vst [vmem:[#allocation9 + $0x30] sm:$0xff] %v1188_v22  ;;  %v719_v27 = vadd.f32 %v718_v25, %v1454_v40  ;;  %1023 = vst [vmem:[#allocation9 + $0x38] sm:$0xff] %v1189_v24  ;;  %v792_v30 = vadd.f32 %v791_v28, %v1462_v14 }
 0x142   :  { %v720_v31 = vpop.f32.mrf.mxu0  ;;  %v793_v33 = vpop.f32.mrf.mxu1 }
 0x143   :  { %v1190_v32 = vpack.c.bf16 %v719_v27, %v717_v26  ;;  %v1191_v34 = vpack.c.bf16 %v792_v30, %v790_v29  ;;  %v721_v36 = vadd.f32 %v720_v31, %v1451_v39  ;;  %v794_v8 = vadd.f32 %v793_v33, %v1459_v43 }
 0x144   :  { %v722_v35 = vpop.f32.mrf.mxu0  ;;  %v795_v38 = vpop.f32.mrf.mxu1 }
 0x145   :  { %1024 = vst [vmem:[#allocation9 + $0x40] sm:$0xff] %v1190_v32  ;;  %v723_v37 = vadd.f32 %v722_v35, %v1454_v40  ;;  %1025 = vst [vmem:[#allocation9 + $0x48] sm:$0xff] %v1191_v34  ;;  %v796_v41 = vadd.f32 %v795_v38, %v1462_v14 }
 0x146   :  { %v726_v42 = vpop.f32.mrf.mxu0  ;;  %v799_v44 = vpop.f32.mrf.mxu1 }
 0x147   :  { %v1192_v0 = vpack.c.bf16 %v723_v37, %v721_v36  ;;  %v1193_v45 = vpack.c.bf16 %v796_v41, %v794_v8  ;;  %v727_v47 = vadd.f32 %v726_v42, %v1451_v39  ;;  %v800_v17 = vadd.f32 %v799_v44, %v1459_v43 }
 0x148   :  { %v728_v46 = vpop.f32.mrf.mxu0  ;;  %v801_v16 = vpop.f32.mrf.mxu1 }
 0x149   :  { %1026 = vst [vmem:[#allocation9 + $0x50] sm:$0xff] %v1192_v0  ;;  %v729_v48 = vadd.f32 %v728_v46, %v1454_v40  ;;  %1027 = vst [vmem:[#allocation9 + $0x58] sm:$0xff] %v1193_v45  ;;  %v802_v49 = vadd.f32 %v801_v16, %v1462_v14 }
 0x14a   :  { %v730_v50 = vpop.f32.mrf.mxu0  ;;  %v803_v11 = vpop.f32.mrf.mxu1 }
 0x14b   :  { %v1194_v51 = vpack.c.bf16 %v729_v48, %v727_v47  ;;  %v1195_v52 = vpack.c.bf16 %v802_v49, %v800_v17  ;;  %v731_v54 = vadd.f32 %v730_v50, %v1451_v39  ;;  %v804_v57 = vadd.f32 %v803_v11, %v1459_v43 }
 0x14c   :  { %v732_v53 = vpop.f32.mrf.mxu0  ;;  %v805_v56 = vpop.f32.mrf.mxu1 }
 0x14d   :  { %1028 = vst [vmem:[#allocation9 + $0x60] sm:$0xff] %v1194_v51  ;;  %v733_v55 = vadd.f32 %v732_v53, %v1454_v40  ;;  %1029 = vst [vmem:[#allocation9 + $0x68] sm:$0xff] %v1195_v52  ;;  %v806_v58 = vadd.f32 %v805_v56, %v1462_v14 }
 0x14f   :  { %v1196_v59 = vpack.c.bf16 %v733_v55, %v731_v54  ;;  %v1197_v60 = vpack.c.bf16 %v806_v58, %v804_v57 }
 0x151   :  { %1030 = vst [vmem:[#allocation9 + $0x70] sm:$0xff] %v1196_v59  ;;  %1031 = vst [vmem:[#allocation9 + $0x78] sm:$0xff] %v1197_v60 }
 0x152   :  { %1305 = shalt.err (!%p1302_p10)
}
 0x153   :  { %1055 = dma.vmem_to_hbm [thread:$0]  %s1050_s12, 2048, %s1512_s4, [#allocation10], %s1331_s8, %s1331_s8, %s1332_s9  }
 0x154   :  { %1318 = dma.done.wait [#allocation4], 2048  }
 0x155   :  { %1319 = vsyncadd [#allocation4], 4294965248 }
 0x156   :  { %1320 = dma.done.wait [#allocation10], 2048  }
 0x157   :  { %1321 = vsyncadd [#allocation10], 4294965248 }
 0x158   :  { %1062 = vsyncpa [#allocation3], 1 }
 0x159   :  { %1063 = vsyncpa [#allocation6], 1 }
 0x15a   :  { %1064 = vsyncpa [#allocation4], 1 }
 0x15b   :  { %1065 = vsyncpa [#allocation10], 1 }

</bundles_post_ra>
